<compile_context>
chip_gen: v6e
topology: v6e:2x2x1
jax: 0.10.0
libtpu: 0.0.40
codegen_flags: <defaults>
</compile_context>

<pallas_src>
import jax
import jax.numpy as jnp
from jax.experimental import pallas as pl
from jax.experimental.pallas import tpu as pltpu

_LANE = 128
_ROW_ALIGN = 32            # row-block granularity safe for f32/bf16/int8 sublane packing
_VMEM_BUDGET = 12 << 20    # per-step working-set budget (bytes), well under 32 MiB scoped


def _round_up(x, m):
    return -(-x // m) * m


def _num_tensorcores():
    """2 TensorCores only on v7x; v5e/v6e expose a single TC per chip."""
    try:
        kind = jax.devices()[0].device_kind.lower()
    except Exception:
        return 1
    return 2 if ("v7" in kind or "tpu7" in kind) else 1


def _pick_block_rows(n_rows, a, l, itemsize_a, itemsize_l):
    """Largest batch-row block whose double-buffered inputs + f32 temps fit the budget."""
    a_pad = _round_up(a, _LANE)
    l_pad = _round_up(l, _LANE)
    per_row = 2 * (2 * a_pad * itemsize_a + 2 * l_pad * itemsize_l)   # 2x-buffered inputs
    per_row += (8 * a_pad + 4 * l_pad) * 4                            # f32 temporaries headroom
    tb = max(_ROW_ALIGN, (_VMEM_BUDGET // per_row) // _ROW_ALIGN * _ROW_ALIGN)
    return n_rows if tb >= n_rows else tb


def _as2d(x):
    if x.ndim == 2:
        return x
    return x.reshape(-1, x.shape[-1]) if x.ndim > 1 else x.reshape(1, -1)


def _make_kernel(t_inner, block_rows, n_rows, apply_mask):
    """Kernel closure over static tiling constants."""

    def kernel(pa_ref, at_ref, plm_ref, lm_ref, obce_ref, omse_ref,
               acc_bce, acc_mse):
        c = pl.program_id(0)          # core (parallel) axis
        i = pl.program_id(1)          # batch-tile reduction (arbitrary) axis

        @pl.when(i == 0)
        def _init():
            acc_bce[...] = jnp.zeros_like(acc_bce)
            acc_mse[...] = jnp.zeros_like(acc_mse)

        # ---- BCE path (pred_attribute vs attributes) ----
        p = pa_ref[...].astype(jnp.float32)
        y = at_ref[...].astype(jnp.float32)
        # PyTorch BCELoss clamps log terms at -100; also keeps OOB garbage rows finite
        # before they are masked out below.
        log_p = jnp.maximum(jnp.log(p), -100.0)
        log_1mp = jnp.maximum(jnp.log(1.0 - p), -100.0)
        bce = -(y * log_p + (1.0 - y) * log_1mp)

        # ---- MSE path (pred_landmark vs landmark) ----
        d = plm_ref[...].astype(jnp.float32) - lm_ref[...].astype(jnp.float32)
        sq = d * d

        if apply_mask:
            # Mask rows past the true batch size (ragged last tile / over-covered grid).
            # Uses the UNCLAMPED global tile index, so clamped re-visited blocks add 0.
            row0 = (c * t_inner + i) * block_rows
            ra = row0 + jax.lax.broadcasted_iota(jnp.int32, bce.shape, 0)
            bce = jnp.where(ra < n_rows, bce, 0.0)
            rl = row0 + jax.lax.broadcasted_iota(jnp.int32, sq.shape, 0)
            sq = jnp.where(rl < n_rows, sq, 0.0)

        # Per-feature partial sums (reduce over the batch-row axis only per step).
        acc_bce[...] += jnp.sum(bce, axis=0, keepdims=True)
        acc_mse[...] += jnp.sum(sq, axis=0, keepdims=True)

        @pl.when(i == t_inner - 1)
        def _finalize():
            # Fold the cross-lane collapse into the kernel: one scalar per core/path.
            obce_ref[...] = jnp.sum(acc_bce[...], keepdims=True).reshape(1, 1, 1)
            omse_ref[...] = jnp.sum(acc_mse[...], keepdims=True).reshape(1, 1, 1)

    return kernel


def multitask_loss(log_vars, pred_attribute, pred_landmark, attributes, landmark,
                   *, block_rows=None):
    """Pallas implementation of MultiTaskLossWrapper.forward. Returns a scalar."""
    pa = _as2d(pred_attribute)
    at = _as2d(attributes)
    plm = _as2d(pred_landmark)
    lm = _as2d(landmark)

    B, A = pa.shape
    Bl, L = plm.shape
    assert at.shape == (B, A) and lm.shape == (Bl, L) and B == Bl

    n_attr = B * A            # true element counts for the means
    n_lm = B * L

    tb = block_rows if block_rows is not None else _pick_block_rows(
        B, A, L, pa.dtype.itemsize, plm.dtype.itemsize)

    t = -(-B // tb)                          # batch tiles (shared by both loss paths)
    n_cores = min(_num_tensorcores(), t)     # 2 only on v7x
    t_inner = -(-t // n_cores)
    apply_mask = (n_cores * t_inner * tb) > B

    def in_map(c, i):
        return (jnp.minimum(c * t_inner + i, t - 1), 0)

    out_map = lambda c, i: (c, 0, 0)

    kernel = _make_kernel(t_inner, tb, B, apply_mask)

    cost = pl.CostEstimate(
        flops=9 * n_attr + 3 * n_lm,
        transcendentals=2 * n_attr,
        bytes_accessed=(2 * n_attr * pa.dtype.itemsize
                        + 2 * n_lm * plm.dtype.itemsize
                        + 2 * n_cores * 4))

    part_bce, part_mse = pl.pallas_call(
        kernel,
        out_shape=(jax.ShapeDtypeStruct((n_cores, 1, 1), jnp.float32),
                   jax.ShapeDtypeStruct((n_cores, 1, 1), jnp.float32)),
        grid_spec=pltpu.PrefetchScalarGridSpec(
            num_scalar_prefetch=0,
            grid=(n_cores, t_inner),
            in_specs=[
                pl.BlockSpec((tb, A), in_map),   # pred_attribute
                pl.BlockSpec((tb, A), in_map),   # attributes
                pl.BlockSpec((tb, L), in_map),   # pred_landmark
                pl.BlockSpec((tb, L), in_map),   # landmark
            ],
            out_specs=(pl.BlockSpec((1, 1, 1), out_map),
                       pl.BlockSpec((1, 1, 1), out_map)),
            scratch_shapes=[pltpu.VMEM((1, A), jnp.float32),   # per-feature BCE accumulator
                            pltpu.VMEM((1, L), jnp.float32)]), # per-feature MSE accumulator
        compiler_params=pltpu.CompilerParams(
            dimension_semantics=("parallel", "arbitrary"),
            vmem_limit_bytes=32 * 1024 * 1024),
        cost_estimate=cost,
    )(pa, at, plm, lm)

    # Tiny epilogue: global means over the TRUE counts + uncertainty weighting.
    loss0 = jnp.sum(part_bce) / jnp.float32(n_attr)
    loss1 = jnp.sum(part_mse) / jnp.float32(n_lm)
    lv0 = log_vars[0].astype(jnp.float32)
    lv1 = log_vars[1].astype(jnp.float32)
    return jnp.exp(-lv0) * loss0 + lv0 + jnp.exp(-lv1) * loss1 + lv1


if __name__ == "__main__":
    key = jax.random.PRNGKey(0)

    def reference(log_vars, pa, plm, at, lm):
        pa = pa.astype(jnp.float32)
        at = at.astype(jnp.float32)
        plm = plm.astype(jnp.float32)
        lm = lm.astype(jnp.float32)
        bce = jnp.mean(-(at * jnp.maximum(jnp.log(pa), -100.0)
                         + (1.0 - at) * jnp.maximum(jnp.log(1.0 - pa), -100.0)))
        mse = jnp.mean((plm - lm) ** 2)
        return (jnp.exp(-log_vars[0]) * bce + log_vars[0]
                + jnp.exp(-log_vars[1]) * mse + log_vars[1])

    def run_case(case_key, B, A, L, dtype=jnp.float32, block_rows=None):
        k1, k2, k3, k4 = jax.random.split(case_key, 4)
        log_vars = jnp.zeros((2,), dtype=jnp.float32)   # nn.Parameter(torch.zeros(2))
        pa = jax.nn.sigmoid(jax.random.normal(k1, (B, A), dtype=jnp.float32)).astype(dtype)
        at = jax.random.bernoulli(k2, 0.5, (B, A)).astype(dtype)
        plm = jax.random.normal(k3, (B, L), dtype=jnp.float32).astype(dtype)
        lm = jax.random.normal(k4, (B, L), dtype=jnp.float32).astype(dtype)
        got = jax.block_until_ready(
            multitask_loss(log_vars, pa, plm, at, lm, block_rows=block_rows))
        want = jax.block_until_ready(reference(log_vars, pa, plm, at, lm))
        assert jnp.allclose(got, want, rtol=1e-4, atol=1e-4), (B, A, L, dtype, got, want)

    k1, k2, k3, k4 = jax.random.split(key, 4)
    run_case(k1, B=8, A=128, L=16)                        # small-input fast path: grid (1,1)
    run_case(k2, B=1003, A=77, L=11)                      # auto block -> single full-batch block
    run_case(k3, B=1003, A=77, L=11, block_rows=256)      # multi-tile grid + ragged-tile mask
    run_case(k4, B=64, A=96, L=16, dtype=jnp.bfloat16)    # bf16 inputs, f32 math in-kernel
    print("KERNEL_OK")
</pallas_src>

<mosaic_0001>
module attributes {stable_mosaic.version = 11 : i64} {
  func.func @kernel(%arg0: i32, %arg1: i32, %arg2: memref<8x128xf32, #tpu.memory_space<vmem>>, %arg3: memref<8x128xf32, #tpu.memory_space<vmem>>, %arg4: memref<8x16xf32, #tpu.memory_space<vmem>>, %arg5: memref<8x16xf32, #tpu.memory_space<vmem>>, %arg6: memref<1x1x1xf32, #tpu.memory_space<vmem>>, %arg7: memref<1x1x1xf32, #tpu.memory_space<vmem>>, %arg8: memref<1x128xf32, #tpu.memory_space<vmem>>, %arg9: memref<1x16xf32, #tpu.memory_space<vmem>>) attributes {dimension_semantics = [#tpu.dimension_semantics<parallel>, #tpu.dimension_semantics<arbitrary>], iteration_bounds = array<i64: 1, 1>, scalar_prefetch = 0 : i64, scratch_operands = 2 : i64, tpu.core_type = #tpu.core_type<tc>, window_params = [{transform_indices = @transform_0, window_bounds = array<i64: 8, 128>}, {transform_indices = @transform_1, window_bounds = array<i64: 8, 128>}, {transform_indices = @transform_2, window_bounds = array<i64: 8, 16>}, {transform_indices = @transform_3, window_bounds = array<i64: 8, 16>}, {transform_indices = @transform_4, window_bounds = array<i64: 1, 1, 1>}, {transform_indices = @transform_5, window_bounds = array<i64: 1, 1, 1>}]} {
    %c0_i32 = arith.constant 0 : i32
    %0 = arith.cmpi eq, %arg1, %c0_i32 : i32
    %1 = arith.extui %0 : i1 to i32
    %c0_i32_0 = arith.constant 0 : i32
    %2 = arith.cmpi ne, %1, %c0_i32_0 : i32
    scf.if %2 {
      %cst_24 = arith.constant 0.000000e+00 : f32
      %37 = vector.broadcast %cst_24 : f32 to vector<1x128xf32>
      %c0_25 = arith.constant 0 : index
      %c0_26 = arith.constant 0 : index
      %38 = vector.load %arg8[%c0_25, %c0_26] : memref<1x128xf32, #tpu.memory_space<vmem>>, vector<1x128xf32>
      tpu.vector_store %arg8[%c0_25, %c0_26], %37 {strides = array<i32>} : memref<1x128xf32, #tpu.memory_space<vmem>>, vector<1x128xf32>,
      %cst_27 = arith.constant 0.000000e+00 : f32
      %39 = vector.broadcast %cst_27 : f32 to vector<1x16xf32>
      %c0_28 = arith.constant 0 : index
      %c0_29 = arith.constant 0 : index
      %40 = vector.load %arg9[%c0_28, %c0_29] : memref<1x16xf32, #tpu.memory_space<vmem>>, vector<1x16xf32>
      tpu.vector_store %arg9[%c0_28, %c0_29], %39 {strides = array<i32>} : memref<1x16xf32, #tpu.memory_space<vmem>>, vector<1x16xf32>,
    } else {
    }
    %c0 = arith.constant 0 : index
    %c0_1 = arith.constant 0 : index
    %3 = vector.load %arg2[%c0, %c0_1] : memref<8x128xf32, #tpu.memory_space<vmem>>, vector<8x128xf32>
    %c0_2 = arith.constant 0 : index
    %c0_3 = arith.constant 0 : index
    %4 = vector.load %arg3[%c0_2, %c0_3] : memref<8x128xf32, #tpu.memory_space<vmem>>, vector<8x128xf32>
    %5 = math.log %3 : vector<8x128xf32>
    %cst = arith.constant -1.000000e+02 : f32
    %6 = vector.broadcast %cst : f32 to vector<8x128xf32>
    %7 = arith.maximumf %5, %6 : vector<8x128xf32>
    %cst_4 = arith.constant 1.000000e+00 : f32
    %8 = vector.broadcast %cst_4 : f32 to vector<8x128xf32>
    %9 = arith.subf %8, %3 : vector<8x128xf32>
    %10 = math.log %9 : vector<8x128xf32>
    %cst_5 = arith.constant -1.000000e+02 : f32
    %11 = vector.broadcast %cst_5 : f32 to vector<8x128xf32>
    %12 = arith.maximumf %10, %11 : vector<8x128xf32>
    %13 = arith.mulf %4, %7 : vector<8x128xf32>
    %cst_6 = arith.constant 1.000000e+00 : f32
    %14 = vector.broadcast %cst_6 : f32 to vector<8x128xf32>
    %15 = arith.subf %14, %4 : vector<8x128xf32>
    %16 = arith.mulf %15, %12 : vector<8x128xf32>
    %17 = arith.addf %13, %16 : vector<8x128xf32>
    %cst_7 = arith.constant 0.000000e+00 : f32
    %18 = vector.broadcast %cst_7 : f32 to vector<8x128xf32>
    %19 = arith.subf %18, %17 : vector<8x128xf32>
    %c0_8 = arith.constant 0 : index
    %c0_9 = arith.constant 0 : index
    %20 = vector.load %arg4[%c0_8, %c0_9] : memref<8x16xf32, #tpu.memory_space<vmem>>, vector<8x16xf32>
    %c0_10 = arith.constant 0 : index
    %c0_11 = arith.constant 0 : index
    %21 = vector.load %arg5[%c0_10, %c0_11] : memref<8x16xf32, #tpu.memory_space<vmem>>, vector<8x16xf32>
    %22 = arith.subf %20, %21 : vector<8x16xf32>
    %23 = arith.mulf %22, %22 : vector<8x16xf32>
    %c0_12 = arith.constant 0 : index
    %c0_13 = arith.constant 0 : index
    %24 = vector.load %arg8[%c0_12, %c0_13] : memref<1x128xf32, #tpu.memory_space<vmem>>, vector<1x128xf32>
    %cst_14 = arith.constant dense<0.000000e+00> : vector<128xf32>
    %25 = vector.multi_reduction <add>, %19, %cst_14 [0] : vector<8x128xf32> to vector<128xf32>
    %26 = vector.shape_cast %25 : vector<128xf32> to vector<1x128xf32>
    %27 = arith.addf %24, %26 : vector<1x128xf32>
    %c0_15 = arith.constant 0 : index
    %c0_16 = arith.constant 0 : index
    %28 = vector.load %arg8[%c0_15, %c0_16] : memref<1x128xf32, #tpu.memory_space<vmem>>, vector<1x128xf32>
    tpu.vector_store %arg8[%c0_15, %c0_16], %27 {strides = array<i32>} : memref<1x128xf32, #tpu.memory_space<vmem>>, vector<1x128xf32>,
    %c0_17 = arith.constant 0 : index
    %c0_18 = arith.constant 0 : index
    %29 = vector.load %arg9[%c0_17, %c0_18] : memref<1x16xf32, #tpu.memory_space<vmem>>, vector<1x16xf32>
    %cst_19 = arith.constant dense<0.000000e+00> : vector<16xf32>
    %30 = vector.multi_reduction <add>, %23, %cst_19 [0] : vector<8x16xf32> to vector<16xf32>
    %31 = vector.shape_cast %30 : vector<16xf32> to vector<1x16xf32>
    %32 = arith.addf %29, %31 : vector<1x16xf32>
    %c0_20 = arith.constant 0 : index
    %c0_21 = arith.constant 0 : index
    %33 = vector.load %arg9[%c0_20, %c0_21] : memref<1x16xf32, #tpu.memory_space<vmem>>, vector<1x16xf32>
    tpu.vector_store %arg9[%c0_20, %c0_21], %32 {strides = array<i32>} : memref<1x16xf32, #tpu.memory_space<vmem>>, vector<1x16xf32>,
    %c0_i32_22 = arith.constant 0 : i32
    %34 = arith.cmpi eq, %arg1, %c0_i32_22 : i32
    %35 = arith.extui %34 : i1 to i32
    %c0_i32_23 = arith.constant 0 : i32
    %36 = arith.cmpi ne, %35, %c0_i32_23 : i32
    scf.if %36 {
      %c0_24 = arith.constant 0 : index
      %c0_25 = arith.constant 0 : index
      %37 = vector.load %arg8[%c0_24, %c0_25] : memref<1x128xf32, #tpu.memory_space<vmem>>, vector<1x128xf32>
      %38 = vector.shape_cast %37 : vector<1x128xf32> to vector<1x1x128xf32>
      %cst_26 = arith.constant dense<0.000000e+00> : vector<1xf32>
      %39 = vector.multi_reduction <add>, %38, %cst_26 [1, 2] : vector<1x1x128xf32> to vector<1xf32>
      %40 = vector.shape_cast %39 : vector<1xf32> to vector<1x1x1xf32>
      %41 = vector.extract %40[0, 0, 0] : f32 from vector<1x1x1xf32>
      %42 = vector.broadcast %41 : f32 to vector<1x1xf32>
      %43 = vector.shape_cast %42 : vector<1x1xf32> to vector<1x1x1xf32>
      %c0_27 = arith.constant 0 : index
      %c0_28 = arith.constant 0 : index
      %c0_29 = arith.constant 0 : index
      %44 = vector.load %arg6[%c0_27, %c0_28, %c0_29] : memref<1x1x1xf32, #tpu.memory_space<vmem>>, vector<1x1x1xf32>
      tpu.vector_store %arg6[%c0_27, %c0_28, %c0_29], %43 {strides = array<i32>} : memref<1x1x1xf32, #tpu.memory_space<vmem>>, vector<1x1x1xf32>,
      %c0_30 = arith.constant 0 : index
      %c0_31 = arith.constant 0 : index
      %45 = vector.load %arg9[%c0_30, %c0_31] : memref<1x16xf32, #tpu.memory_space<vmem>>, vector<1x16xf32>
      %46 = vector.shape_cast %45 : vector<1x16xf32> to vector<1x1x16xf32>
      %cst_32 = arith.constant dense<0.000000e+00> : vector<1xf32>
      %47 = vector.multi_reduction <add>, %46, %cst_32 [1, 2] : vector<1x1x16xf32> to vector<1xf32>
      %48 = vector.shape_cast %47 : vector<1xf32> to vector<1x1x1xf32>
      %49 = vector.extract %48[0, 0, 0] : f32 from vector<1x1x1xf32>
      %50 = vector.broadcast %49 : f32 to vector<1x1xf32>
      %51 = vector.shape_cast %50 : vector<1x1xf32> to vector<1x1x1xf32>
      %c0_33 = arith.constant 0 : index
      %c0_34 = arith.constant 0 : index
      %c0_35 = arith.constant 0 : index
      %52 = vector.load %arg7[%c0_33, %c0_34, %c0_35] : memref<1x1x1xf32, #tpu.memory_space<vmem>>, vector<1x1x1xf32>
      tpu.vector_store %arg7[%c0_33, %c0_34, %c0_35], %51 {strides = array<i32>} : memref<1x1x1xf32, #tpu.memory_space<vmem>>, vector<1x1x1xf32>,
    } else {
    }
    return
  }
  func.func @transform_0(%arg0: i32, %arg1: i32) -> (i32, i32) {
    %c1_i32 = arith.constant 1 : i32
    %0 = arith.muli %arg0, %c1_i32 : i32
    %1 = arith.addi %0, %arg1 : i32
    %c0_i32 = arith.constant 0 : i32
    %2 = arith.minsi %1, %c0_i32 : i32
    %c0_i32_0 = arith.constant 0 : i32
    %c0_i32_1 = arith.constant 0 : i32
    return %2, %c0_i32_0 : i32, i32
  }
  func.func @transform_1(%arg0: i32, %arg1: i32) -> (i32, i32) {
    %c1_i32 = arith.constant 1 : i32
    %0 = arith.muli %arg0, %c1_i32 : i32
    %1 = arith.addi %0, %arg1 : i32
    %c0_i32 = arith.constant 0 : i32
    %2 = arith.minsi %1, %c0_i32 : i32
    %c0_i32_0 = arith.constant 0 : i32
    %c0_i32_1 = arith.constant 0 : i32
    return %2, %c0_i32_0 : i32, i32
  }
  func.func @transform_2(%arg0: i32, %arg1: i32) -> (i32, i32) {
    %c1_i32 = arith.constant 1 : i32
    %0 = arith.muli %arg0, %c1_i32 : i32
    %1 = arith.addi %0, %arg1 : i32
    %c0_i32 = arith.constant 0 : i32
    %2 = arith.minsi %1, %c0_i32 : i32
    %c0_i32_0 = arith.constant 0 : i32
    %c0_i32_1 = arith.constant 0 : i32
    return %2, %c0_i32_0 : i32, i32
  }
  func.func @transform_3(%arg0: i32, %arg1: i32) -> (i32, i32) {
    %c1_i32 = arith.constant 1 : i32
    %0 = arith.muli %arg0, %c1_i32 : i32
    %1 = arith.addi %0, %arg1 : i32
    %c0_i32 = arith.constant 0 : i32
    %2 = arith.minsi %1, %c0_i32 : i32
    %c0_i32_0 = arith.constant 0 : i32
    %c0_i32_1 = arith.constant 0 : i32
    return %2, %c0_i32_0 : i32, i32
  }
  func.func @transform_4(%arg0: i32, %arg1: i32) -> (i32, i32, i32) {
    %c0_i32 = arith.constant 0 : i32
    %c0_i32_0 = arith.constant 0 : i32
    %c0_i32_1 = arith.constant 0 : i32
    return %arg0, %c0_i32, %c0_i32_0 : i32, i32, i32
  }
  func.func @transform_5(%arg0: i32, %arg1: i32) -> (i32, i32, i32) {
    %c0_i32 = arith.constant 0 : i32
    %c0_i32_0 = arith.constant 0 : i32
    %c0_i32_1 = arith.constant 0 : i32
    return %arg0, %c0_i32, %c0_i32_0 : i32, i32, i32
  }
}

</mosaic_0001>

<bundles_post_ra>
// kernel: tpu_custom_call.1
= control target key start
LH: loop header
LB: loop body
LE: loop exit
PB: predicated region body
PF: predicated region fallthrough
CT: control target
= control target key end

     0   :  { %11 = vsyncpa [#allocation5], 0  ;;  %s421_s0 = inlined_call_operand.hbm [shape: f32[8,128], index: 0, kind: input, shape index: {}]   ;;  %s422_s1 = inlined_call_operand.hbm [shape: f32[8,128], index: 1, kind: input, shape index: {}]   ;;  %s423_s2 = inlined_call_operand.hbm [shape: f32[8,16], index: 2, kind: input, shape index: {}]   ;;  %s424_s3 = inlined_call_operand.hbm [shape: f32[8,16], index: 3, kind: input, shape index: {}]   ;;  %s425_s4 = inlined_call_operand.hbm [shape: f32[1,1,1], index: 4, kind: output, shape index: {0}]   ;;  %s426_s5 = inlined_call_operand.hbm [shape: f32[1,1,1], index: 5, kind: output, shape index: {1}]  }
   0x1   :  { %12 = vsyncpa [#allocation8], 0 }
   0x2   :  { %13 = vsyncpa [#allocation11], 0 }
   0x3   :  { %14 = vsyncpa [#allocation6], 0 }
   0x4   :  { %15 = vsyncpa [#allocation14], 0  ;;  %s361_s18 = smov [#allocation7]   ;;  %s362_s20 = smov [#allocation4]  }
   0x5   :  { %s42_s19 = sshll.u32 %s361_s18, 4  ;;  %s27_s21 = sshll.u32 %s362_s20, 4  ;;  %s43_s19 = int_to_ptr.vmem [resolvable:$true] %s42_s19  ;;  %s28_s21 = int_to_ptr.vmem [resolvable:$true] %s27_s21 }
   0x6   :  { %s239_s22 = scalar_lea.vmem %s43_s19, 128  ;;  %p244_p1 = scmp.lt.s32.totalorder %s43_s19, %s43_s19 }
   0x7   :  { %p240_p0 = scmp.ne.s32.totalorder %s43_s19, %s239_s22  ;;  %p245_p2 = scmp.lt.s32.totalorder %s239_s22, %s239_s22 }
   0x9   :  { %p246_p3 = por %p245_p2, %p244_p1 }
   0xb   :  { %p247_p4 = pnand %p246_p3, %p240_p0 }
   0xd   :  { %250 = shalt.err (!%p247_p4)
}
   0xe   :  { %45 = dma.hbm_to_vmem [thread:$0]  %s422_s1, 128, %s43_s19, [#allocation8]  }
   0xf   :  { %s259_s25 = scalar_lea.vmem %s28_s21, 128  ;;  %p264_p6 = scmp.lt.s32.totalorder %s28_s21, %s28_s21 }
  0x10   :  { %p260_p5 = scmp.ne.s32.totalorder %s28_s21, %s259_s25  ;;  %p265_p7 = scmp.lt.s32.totalorder %s259_s25, %s259_s25 }
  0x12   :  { %p266_p8 = por %p265_p7, %p264_p6 }
  0x14   :  { %p267_p9 = pnand %p266_p8, %p260_p5 }
  0x16   :  { %270 = shalt.err (!%p267_p9)
}
  0x17   :  { %30 = dma.hbm_to_vmem [thread:$0]  %s421_s0, 128, %s28_s21, [#allocation5]  }
  0x18   :  { %s363_s28 = smov [#allocation9]   ;;  %s364_s30 = smov [#allocation10]  }
  0x19   :  { %s57_s29 = sshll.u32 %s363_s28, 4  ;;  %s72_s6 = sshll.u32 %s364_s30, 4  ;;  %s58_s29 = int_to_ptr.vmem [resolvable:$true] %s57_s29  ;;  %s73_s6 = int_to_ptr.vmem [resolvable:$true] %s72_s6 }
  0x1a   :  { %s279_s7 = scalar_lea.vmem %s58_s29, 128  ;;  %p284_p11 = scmp.lt.s32.totalorder %s58_s29, %s58_s29 }
  0x1b   :  { %p280_p10 = scmp.ne.s32.totalorder %s58_s29, %s279_s7  ;;  %p285_p12 = scmp.lt.s32.totalorder %s279_s7, %s279_s7 }
  0x1d   :  { %p286_p13 = por %p285_p12, %p284_p11 }
  0x1f   :  { %p287_p0 = pnand %p286_p13, %p280_p10 }
  0x21   :  { %290 = shalt.err (!%p287_p0)
}
  0x22   :  { %60 = dma.hbm_to_vmem [thread:$0]  %s423_s2, 128, %s58_s29, [#allocation8]  }
  0x23   :  { %s299_s9 = scalar_lea.vmem %s73_s6, 128  ;;  %p304_p2 = scmp.lt.s32.totalorder %s73_s6, %s73_s6 }
  0x24   :  { %p300_p1 = scmp.ne.s32.totalorder %s73_s6, %s299_s9  ;;  %p305_p3 = scmp.lt.s32.totalorder %s299_s9, %s299_s9 }
  0x26   :  { %p306_p4 = por %p305_p3, %p304_p2 }
  0x28   :  { %p307_p5 = pnand %p306_p4, %p300_p1 }
  0x2a   :  { %310 = shalt.err (!%p307_p5)
}
  0x2b   :  { %75 = dma.hbm_to_vmem [thread:$0]  %s424_s3, 128, %s73_s6, [#allocation11]  }
  0x2c   :  { %351 = dma.done.wait [#allocation5], 128  }
  0x2d   :  { %352 = vsyncadd [#allocation5], 4294967168 }
  0x2e   :  { %353 = dma.done.wait [#allocation8], 256  }
  0x2f   :  { %354 = vsyncadd [#allocation8], 4294967040 }
  0x30   :  { %355 = dma.done.wait [#allocation11], 128  }
  0x31   :  { %356 = vsyncadd [#allocation11], 4294967168  ;;  %vm105_vm0 = vcmask 122880   ;;  %v365_v0 = vmov 0.0   ;;  %v107_v1 = vld [vmem:[#allocation4] sm:$0xff]  ;;  %v121_v2 = vld [vmem:[#allocation9] sm:$0xff] }
  0x32   :  { %104 = vst [vmem:[#allocation2] sm:$0x1] %v365_v0  ;;  %106 = vst.msk [vmem:[#allocation3] sm:$0x1] %vm105_vm0, %v365_v0  ;;  %227 = vlog2.f32 %v107_v1  ;;  %v112_v3 = vsub.f32 1.0, %v107_v1  ;;  %v122_v4 = vld [vmem:[#allocation10] sm:$0xff] }
  0x33   :  { %v123_v5 = vsub.f32 %v121_v2, %v122_v4  ;;  %vm135_vm1 = vcmask 130048   ;;  %v108_v13 = vld [vmem:[#allocation7] sm:$0xff]  ;;  %vm150_vm2 = vcmask 1040384   ;;  %s366_s2 = smov [#allocation12]   ;;  %vm162_vm3 = vcmask 0   ;;  %s367_s12 = smov [#allocation13]  }
  0x34   :  { %229 = vlog2.f32 %v112_v3  ;;  %v117_v20 = vsub.f32 1.0, %v108_v13  ;;  %s183_s3 = sshll.u32 %s366_s2, 4  ;;  %s193_s13 = sshll.u32 %s367_s12, 4  ;;  %s184_s3 = int_to_ptr.vmem [resolvable:$true] %s183_s3  ;;  %s194_s13 = int_to_ptr.vmem [resolvable:$true] %s193_s13 }
  0x35   :  { %v124_v6 = vmul.f32 %v123_v5, %v123_v5  ;;  %s311_s14 = scalar_lea.vmem %s184_s3, 16  ;;  %s315_s15 = scalar_lea.vmem %s184_s3, 32 }
  0x36   :  { %p312_p6 = scmp.ne.s32.totalorder %s184_s3, %s311_s14  ;;  %p316_p7 = scmp.lt.s32.totalorder %s184_s3, %s184_s3 }
  0x37   :  { %v136_v7 = vsel %vm135_vm1, %v124_v6, 0.0  ;;  %p317_p8 = scmp.lt.s32.totalorder %s315_s15, %s311_s14 }
  0x38   :  { %v137_v8 = vrot.slane %v136_v7, 4 }
  0x39   :  { %v134_v17 = vld [vmem:[#allocation3] sm:$0x1]  ;;  %v125_v33 = vld [vmem:[#allocation2] sm:$0x1]  ;;  %p318_p9 = por %p317_p8, %p316_p7 }
  0x3a   :  { %v138_v9 = vadd.f32 %v137_v8, %v136_v7 }
  0x3b   :  { %p319_p10 = pnand %p318_p9, %p312_p6 }
  0x3c   :  { %v139_v10 = vrot.slane %v138_v9, 2 }
  0x3e   :  { %v140_v11 = vadd.f32 %v139_v10, %v138_v9 }
  0x3f   :  { %v228_v12 = vpop.eup %227 }
  0x40   :  { %v110_v14 = vmul.f32 0.6931472, %v228_v12  ;;  %v141_v15 = vrot.slane %v140_v11, 1 }
  0x41   :  { %v230_v16 = vpop.eup %229 }
  0x42   :  { %v111_v18 = vmax.f32 %v110_v14, -100.0  ;;  %v114_v19 = vmul.f32 0.6931472, %v230_v16  ;;  %v142_v21 = vadd.f32 %v141_v15, %v140_v11 }
  0x44   :  { %v115_v22 = vmax.f32 %v114_v19, -100.0  ;;  %v116_v23 = vmul.f32 %v111_v18, %v108_v13  ;;  %v143_v24 = vadd.f32 %v142_v21, %v134_v17 }
  0x46   :  { %v118_v25 = vmul.f32 %v117_v20, %v115_v22  ;;  %145 = vst.msk [vmem:[#allocation3] sm:$0x1] %vm105_vm0, %v143_v24 }
  0x48   :  { %v119_v26 = vadd.f32 %v118_v25, %v116_v23 }
  0x4a   :  { %v120_v27 = vsub.f32 0.0, %v119_v26 }
  0x4c   :  { %v126_v28 = vrot.slane %v120_v27, 4 }
  0x4d   :  { %v164_v37 = vld [vmem:[#allocation3] sm:$0x1] }
  0x4e   :  { %v127_v29 = vadd.f32 %v126_v28, %v120_v27  ;;  %v165_v39 = vsel %vm105_vm0, %v164_v37, 0.0 }
  0x50   :  { %v128_v30 = vrot.slane %v127_v29, 2 }
  0x52   :  { %v129_v31 = vadd.f32 %v128_v30, %v127_v29 }
  0x54   :  { %v130_v32 = vrot.slane %v129_v31, 1 }
  0x56   :  { %v131_v34 = vadd.f32 %v130_v32, %v129_v31 }
  0x58   :  { %v132_v35 = vadd.f32 %v131_v34, %v125_v33 }
  0x5a   :  { %133 = vst [vmem:[#allocation2] sm:$0x1] %v132_v35 }
  0x61   :  { %v149_v36 = vld [vmem:[#allocation2] sm:$0x1] }
  0x62   :  { %v151_v38 = vsel %vm150_vm2, %v149_v36, 0.0 }
  0x63   :  { %152 = vadd.xlane.f32.xlu0 %v151_v38 }
  0x67   :  { %166 = vadd.xlane.f32.xlu0 %v165_v39 }
  0xec   :  { %v153_v40 = vpop.xlane.xlu0 %152 }
  0xed   :  { %v154_v41 = vrot.slane %v153_v40, 4 }
  0xef   :  { %v155_v42 = vadd.f32 %v154_v41, %v153_v40 }
  0xf0   :  { %v167_v43 = vpop.xlane.xlu0 %166 }
  0xf1   :  { %v156_v44 = vrot.slane %v155_v42, 2  ;;  %v168_v45 = vrot.slane %v167_v43, 4 }
  0xf3   :  { %v169_v46 = vadd.f32 %v168_v45, %v167_v43  ;;  %v157_v47 = vadd.f32 %v156_v44, %v155_v42 }
  0xf5   :  { %v170_v48 = vrot.slane %v169_v46, 2  ;;  %v158_v49 = vrot.slane %v157_v47, 1 }
  0xf7   :  { %v171_v50 = vadd.f32 %v170_v48, %v169_v46  ;;  %v159_v51 = vadd.f32 %v158_v49, %v157_v47 }
  0xf9   :  { %216 = vpush %v159_v51  ;;  %v172_v52 = vrot.slane %v171_v50, 1 }
  0xfb   :  { %v173_v53 = vadd.f32 %v172_v52, %v171_v50 }
  0xfd   :  { %218 = vpush %v173_v53 }
 0x12a   :  { %s217_s11 = spop %216 }
 0x12b   :  { %v161_v54 = vstv %s217_s11 }
 0x12c   :  { %163 = vst.msk [vmem:[#allocation12] sm:$0x1] %vm162_vm3, %v161_v54 }
 0x12d   :  { %322 = shalt.err (!%p319_p10)
}
 0x12e   :  { %186 = dma.vmem_to_hbm [thread:$0]  %s184_s3, 16, %s425_s4, [#allocation6]  }
 0x12f   :  { %s219_s18 = spop %218  ;;  %s331_s19 = scalar_lea.vmem %s194_s13, 16 }
 0x130   :  { %v175_v55 = vstv %s219_s18  ;;  %p332_p11 = scmp.ne.s32.totalorder %s194_s13, %s331_s19  ;;  %s335_s20 = scalar_lea.vmem %s194_s13, 32 }
 0x131   :  { %176 = vst.msk [vmem:[#allocation13] sm:$0x1] %vm162_vm3, %v175_v55  ;;  %p336_p12 = scmp.lt.s32.totalorder %s194_s13, %s194_s13  ;;  %p337_p13 = scmp.lt.s32.totalorder %s335_s20, %s331_s19 }
 0x133   :  { %p338_p0 = por %p337_p13, %p336_p12 }
 0x135   :  { %p339_p1 = pnand %p338_p0, %p332_p11 }
 0x137   :  { %342 = shalt.err (!%p339_p1)
}
 0x138   :  { %196 = dma.vmem_to_hbm [thread:$0]  %s194_s13, 16, %s426_s5, [#allocation14]  }
 0x139   :  { %357 = dma.done.wait [#allocation6], 16  }
 0x13a   :  { %358 = vsyncadd [#allocation6], 4294967280 }
 0x13b   :  { %359 = dma.done.wait [#allocation14], 16  }
 0x13c   :  { %360 = vsyncadd [#allocation14], 4294967280 }
 0x13d   :  { %203 = vsyncpa [#allocation5], 1 }
 0x13e   :  { %204 = vsyncpa [#allocation8], 1 }
 0x13f   :  { %205 = vsyncpa [#allocation11], 1 }
 0x140   :  { %206 = vsyncpa [#allocation6], 1 }
 0x141   :  { %207 = vsyncpa [#allocation14], 1 }

</bundles_post_ra>
